<compile_context>
chip_gen: v7x
topology: tpu7x:2x2x1
jax: 0.10.0
libtpu: 0.0.40
codegen_flags: <defaults>
</compile_context>

<pallas_src>
import functools

import jax
import jax.numpy as jnp
from jax.experimental import pallas as pl
from jax.experimental.pallas import tpu as pltpu


# ----------------------------------------------------------------------------- #
# Kernel
# ----------------------------------------------------------------------------- #
def _conv1d_fc_kernel(x_ref, wconv_ref, brep_ref, fcwt_ref, fcb_ref, out_ref):
    """Fused conv1d(k=3, pad=1) + ReLU + flatten + linear.

    x_ref    : (bb, L)    bf16 VMEM  raw input rows (no explicit padding needed)
    wconv_ref: (L, C*L)   bf16 VMEM  banded conv-as-matmul weight,
                                     wconv[j, c*L+l] = w[c, j-l+1] (0 outside band)
    brep_ref : (1, C*L)   f32  VMEM  conv bias replicated per output position
    fcwt_ref : (C*L, N)   bf16 VMEM  fc weight^T (true N, no lane padding)
    fcb_ref  : (1, N)     f32  VMEM  fc bias
    out_ref  : (bb, N)    f32  VMEM
    """
    # conv + bias + ReLU as ONE banded matmul; result is already in PyTorch's
    # channel-major flatten order (index = c*L + l).
    hf = jnp.dot(x_ref[...], wconv_ref[...], preferred_element_type=jnp.float32)
    hf = jnp.maximum(hf + brep_ref[...], 0.0)                       # (bb, C*L) f32
    # single fused FC matmul (K = C*L = 256 fills a full MXU pass), f32 accumulate
    out = jnp.dot(hf.astype(fcwt_ref.dtype), fcwt_ref[...],
                  preferred_element_type=jnp.float32)
    out_ref[...] = out + fcb_ref[...]


# ----------------------------------------------------------------------------- #
# One-time parameter preprocessing (hoisted out of the per-call path)
# ----------------------------------------------------------------------------- #
def preprocess_conv1d_fc_params(conv_w, conv_b, fc_w, fc_b,
                                *, compute_dtype=jnp.bfloat16):
    """Build MXU-friendly weights once per parameter set.

    conv_w: (C, 1, 3), conv_b: (C,), fc_w: (N, C*L), fc_b: (N,)
    """
    C, cin, K = conv_w.shape
    assert cin == 1 and K == 3
    N, CL = fc_w.shape
    L = CL // C
    assert C * L == CL

    # Guard the O(C*L^2) banded weight against sequence-length scaling: it must
    # stay VMEM-resident (v7x has only 64 MiB VMEM / 32 MiB scoped default).
    # TODO(synk): if L grows past this budget, tile the C*L axis with a second
    # grid dimension or compute the conv with 3 shifted VPU FMAs (pltpu.roll)
    # and keep only the FC matmul on the MXU.
    wconv_bytes = L * CL * jnp.dtype(compute_dtype).itemsize
    assert wconv_bytes <= 12 * 1024 * 1024, (
        "banded conv weight too large to keep VMEM-resident; tile C*L axis")

    # Banded conv-as-matmul weight: wconv[j, c*L + l] = conv_w[c, 0, k], k = j-l+1.
    jj = jnp.arange(L)[:, None]                                # input position
    ll = jnp.arange(L)[None, :]                                # output position
    kk = jj - ll + 1                                           # tap index
    valid = (kk >= 0) & (kk <= 2)
    kc = jnp.clip(kk, 0, 2)
    w3 = conv_w[:, 0, :].astype(jnp.float32)                   # (C, 3)
    band = jnp.where(valid[None, :, :], w3[:, kc], 0.0)        # (C, L, L)
    wconv = jnp.transpose(band, (1, 0, 2)).reshape(L, CL).astype(compute_dtype)

    brep = jnp.repeat(conv_b.astype(jnp.float32), L).reshape(1, CL)   # (1, C*L) f32
    fcwt = fc_w.T.astype(compute_dtype)                               # (C*L, N)
    fcb = fc_b.astype(jnp.float32).reshape(1, N)                      # (1, N)  f32

    return dict(wconv=wconv, brep=brep, fcwt=fcwt, fcb=fcb,
                L=L, C=C, N=N, compute_dtype=compute_dtype)


def _choose_block_b(B, cap):
    """Adaptive batch block:
      * big blocks (up to `cap`) to amortise the ~0.35us/step pipeline overhead;
      * for large B, pick <= ceil(B/2) so the grid has >=2 steps and
        dimension_semantics=("parallel",) shards the batch across v7x's two
        TensorCores (v5e/v6e have a single TC, unaffected);
      * multiple of 8 sublanes (or equal to B for tiny batches).
    """
    if B <= 16:
        return B                       # single block; block == full dim is legal
    bb = -(-B // 2)                    # ceil(B/2) -> at least a 2-step grid
    bb = -(-bb // 8) * 8               # round up to a sublane multiple
    return min(bb, cap)


# ----------------------------------------------------------------------------- #
# Forward
# ----------------------------------------------------------------------------- #
def conv1d_model_forward(x, params, *, block_b_cap=4096,
                         vmem_limit_bytes=32 * 1024 * 1024):
    """x: (B, 1, L) f32; returns (B, num_classes) f32 (matches PyTorch forward)."""
    B, cin, L = x.shape
    assert cin == 1 and L == params["L"]
    N = params["N"]
    CL = params["C"] * L

    x2 = x[:, 0, :].astype(params["compute_dtype"])            # (B, L) bf16

    bb = _choose_block_b(B, block_b_cap)
    grid = (pl.cdiv(B, bb),)

    out = pl.pallas_call(
        _conv1d_fc_kernel,
        out_shape=jax.ShapeDtypeStruct((B, N), jnp.float32),
        grid_spec=pltpu.PrefetchScalarGridSpec(
            num_scalar_prefetch=0,
            grid=grid,
            in_specs=[
                pl.BlockSpec((bb, L), lambda i: (i, 0)),        # x rows (gridded)
                pl.BlockSpec((L, CL), lambda i: (0, 0)),        # conv weight (resident)
                pl.BlockSpec((1, CL), lambda i: (0, 0)),        # conv bias (replicated)
                pl.BlockSpec((CL, N), lambda i: (0, 0)),        # fc weight^T (true N)
                pl.BlockSpec((1, N), lambda i: (0, 0)),         # fc bias
            ],
            # True-N output block: masked store is negligible; removes the padded
            # (bb,128) writeback and the wrapper-side slice copy entirely.
            out_specs=pl.BlockSpec((bb, N), lambda i: (i, 0)),
        ),
        compiler_params=pltpu.CompilerParams(
            dimension_semantics=("parallel",),
            vmem_limit_bytes=vmem_limit_bytes,
        ),
    )(x2, params["wconv"], params["brep"], params["fcwt"], params["fcb"])
    return out


# ----------------------------------------------------------------------------- #
# Pure-JAX reference (matches the PyTorch forward exactly, f32)
# ----------------------------------------------------------------------------- #
def _reference_forward(x, conv_w, conv_b, fc_w, fc_b):
    B, _, L = x.shape
    xp = jnp.pad(x[:, 0, :], ((0, 0), (1, 1)))
    shifts = jnp.stack([xp[:, 0:L], xp[:, 1:L + 1], xp[:, 2:L + 2]], axis=-1)
    h = jnp.einsum('blk,ck->bcl', shifts, conv_w[:, 0, :]) + conv_b[None, :, None]
    h = jnp.maximum(h, 0.0)
    hf = h.reshape(B, -1)                                  # channel-major flatten
    return hf @ fc_w.T + fc_b


if __name__ == "__main__":
    # Small shapes consistent with the module: batch=2, input_size=16, classes=8
    B, L, C, N = 2, 16, 16, 8

    key = jax.random.PRNGKey(0)
    k1, k2, k3, k4, k5 = jax.random.split(key, 5)
    x = jax.random.normal(k1, (B, 1, L), dtype=jnp.float32)
    conv_w = (0.2 * jax.random.normal(k2, (C, 1, 3))).astype(jnp.float32)
    conv_b = (0.1 * jax.random.normal(k3, (C,))).astype(jnp.float32)
    fc_w = (0.05 * jax.random.normal(k4, (N, C * L))).astype(jnp.float32)
    fc_b = (0.1 * jax.random.normal(k5, (N,))).astype(jnp.float32)

    # Weight preprocessing is done once per parameter set (hoisted out of forward).
    params = preprocess_conv1d_fc_params(conv_w, conv_b, fc_w, fc_b)

    out = conv1d_model_forward(x, params)
    out = jax.block_until_ready(out)
    ref = _reference_forward(x, conv_w, conv_b, fc_w, fc_b)
    assert out.shape == (B, N)
    # bf16 operands with f32 accumulation -> tolerance loosened accordingly.
    assert jnp.allclose(out, ref, atol=2e-2, rtol=2e-2), (out, ref)

    # Exercise the gridded / non-divisible batch path (>=2 grid steps).
    B2 = 100
    x2 = jax.random.normal(jax.random.PRNGKey(1), (B2, 1, L), dtype=jnp.float32)
    out2 = jax.block_until_ready(conv1d_model_forward(x2, params))
    ref2 = _reference_forward(x2, conv_w, conv_b, fc_w, fc_b)
    assert out2.shape == (B2, N)
    assert jnp.allclose(out2, ref2, atol=2e-2, rtol=2e-2)

    print("KERNEL_OK")
</pallas_src>

<mosaic_0001>
module attributes {stable_mosaic.version = 11 : i64} {
  func.func @_conv1d_fc_kernel(%arg0: i32, %arg1: memref<2x16xbf16, #tpu.memory_space<vmem>>, %arg2: memref<16x256xbf16, #tpu.memory_space<vmem>>, %arg3: memref<1x256xf32, #tpu.memory_space<vmem>>, %arg4: memref<256x8xbf16, #tpu.memory_space<vmem>>, %arg5: memref<1x8xf32, #tpu.memory_space<vmem>>, %arg6: memref<2x8xf32, #tpu.memory_space<vmem>>) attributes {dimension_semantics = [#tpu.dimension_semantics<parallel>], iteration_bounds = array<i64: 1>, scalar_prefetch = 0 : i64, scratch_operands = 0 : i64, tpu.core_type = #tpu.core_type<tc>, window_params = [{transform_indices = @transform_0, window_bounds = array<i64: 2, 16>}, {pipeline_mode = #tpu.pipeline_mode<synchronous>, transform_indices = @transform_1, window_bounds = array<i64: 16, 256>}, {pipeline_mode = #tpu.pipeline_mode<synchronous>, transform_indices = @transform_2, window_bounds = array<i64: 1, 256>}, {pipeline_mode = #tpu.pipeline_mode<synchronous>, transform_indices = @transform_3, window_bounds = array<i64: 256, 8>}, {pipeline_mode = #tpu.pipeline_mode<synchronous>, transform_indices = @transform_4, window_bounds = array<i64: 1, 8>}, {transform_indices = @transform_5, window_bounds = array<i64: 2, 8>}]} {
    %c0 = arith.constant 0 : index
    %c0_0 = arith.constant 0 : index
    %0 = vector.load %arg1[%c0, %c0_0] : memref<2x16xbf16, #tpu.memory_space<vmem>>, vector<2x16xbf16>
    %c0_1 = arith.constant 0 : index
    %c0_2 = arith.constant 0 : index
    %1 = vector.load %arg2[%c0_1, %c0_2] : memref<16x256xbf16, #tpu.memory_space<vmem>>, vector<16x256xbf16>
    %cst = arith.constant dense<0.000000e+00> : vector<2x256xf32>
    %2 = tpu.matmul %0, %1, %cst {dimension_numbers = #tpu.dot_dimension_numbers<[1], [0], [0], [1], [0, 0, 1, 1], [], []>} : vector<2x16xbf16>, vector<16x256xbf16>, vector<2x256xf32> -> vector<2x256xf32>
    %c0_3 = arith.constant 0 : index
    %c0_4 = arith.constant 0 : index
    %3 = vector.load %arg3[%c0_3, %c0_4] : memref<1x256xf32, #tpu.memory_space<vmem>>, vector<1x256xf32>
    %4 = vector.broadcast %3 : vector<1x256xf32> to vector<2x256xf32>
    %5 = arith.addf %2, %4 : vector<2x256xf32>
    %cst_5 = arith.constant 0.000000e+00 : f32
    %6 = vector.broadcast %cst_5 : f32 to vector<2x256xf32>
    %7 = arith.maximumf %5, %6 : vector<2x256xf32>
    %8 = arith.truncf %7 : vector<2x256xf32> to vector<2x256xbf16>
    %c0_6 = arith.constant 0 : index
    %c0_7 = arith.constant 0 : index
    %9 = vector.load %arg4[%c0_6, %c0_7] : memref<256x8xbf16, #tpu.memory_space<vmem>>, vector<256x8xbf16>
    %cst_8 = arith.constant dense<0.000000e+00> : vector<2x8xf32>
    %10 = tpu.matmul %8, %9, %cst_8 {dimension_numbers = #tpu.dot_dimension_numbers<[1], [0], [0], [1], [0, 0, 1, 1], [], []>} : vector<2x256xbf16>, vector<256x8xbf16>, vector<2x8xf32> -> vector<2x8xf32>
    %c0_9 = arith.constant 0 : index
    %c0_10 = arith.constant 0 : index
    %11 = vector.load %arg5[%c0_9, %c0_10] : memref<1x8xf32, #tpu.memory_space<vmem>>, vector<1x8xf32>
    %12 = vector.broadcast %11 : vector<1x8xf32> to vector<2x8xf32>
    %13 = arith.addf %10, %12 : vector<2x8xf32>
    %c0_11 = arith.constant 0 : index
    %c0_12 = arith.constant 0 : index
    %14 = vector.load %arg6[%c0_11, %c0_12] : memref<2x8xf32, #tpu.memory_space<vmem>>, vector<2x8xf32>
    tpu.vector_store %arg6[%c0_11, %c0_12], %13 {strides = array<i32>} : memref<2x8xf32, #tpu.memory_space<vmem>>, vector<2x8xf32>,
    return
  }
  func.func @transform_0(%arg0: i32) -> (i32, i32) {
    %c0_i32 = arith.constant 0 : i32
    %c0_i32_0 = arith.constant 0 : i32
    return %arg0, %c0_i32 : i32, i32
  }
  func.func @transform_1(%arg0: i32) -> (i32, i32) {
    %c0_i32 = arith.constant 0 : i32
    %c0_i32_0 = arith.constant 0 : i32
    %c0_i32_1 = arith.constant 0 : i32
    return %c0_i32, %c0_i32_0 : i32, i32
  }
  func.func @transform_2(%arg0: i32) -> (i32, i32) {
    %c0_i32 = arith.constant 0 : i32
    %c0_i32_0 = arith.constant 0 : i32
    %c0_i32_1 = arith.constant 0 : i32
    return %c0_i32, %c0_i32_0 : i32, i32
  }
  func.func @transform_3(%arg0: i32) -> (i32, i32) {
    %c0_i32 = arith.constant 0 : i32
    %c0_i32_0 = arith.constant 0 : i32
    %c0_i32_1 = arith.constant 0 : i32
    return %c0_i32, %c0_i32_0 : i32, i32
  }
  func.func @transform_4(%arg0: i32) -> (i32, i32) {
    %c0_i32 = arith.constant 0 : i32
    %c0_i32_0 = arith.constant 0 : i32
    %c0_i32_1 = arith.constant 0 : i32
    return %c0_i32, %c0_i32_0 : i32, i32
  }
  func.func @transform_5(%arg0: i32) -> (i32, i32) {
    %c0_i32 = arith.constant 0 : i32
    %c0_i32_0 = arith.constant 0 : i32
    return %arg0, %c0_i32 : i32, i32
  }
}

</mosaic_0001>

<bundles_post_ra>
// kernel: tpu_custom_call.1
= control target key start
LH: loop header
LB: loop body
LE: loop exit
PB: predicated region body
PF: predicated region fallthrough
CT: control target
= control target key end

     0   :  { %v374_v2 = vmov 0   ;;  %vm47_vm0 = vcmask 130048   ;;  %s481_s0 = inlined_call_operand.vmem [shape: bf16[2,16], index: 0, kind: input, shape index: {}]   ;;  %s482_s1 = inlined_call_operand.vmem [shape: bf16[16,256], index: 1, kind: input, shape index: {}]   ;;  %s483_s2 = inlined_call_operand.vmem [shape: f32[1,256], index: 2, kind: input, shape index: {}]   ;;  %s484_s3 = inlined_call_operand.vmem [shape: bf16[256,8], index: 3, kind: input, shape index: {}]   ;;  %s485_s4 = inlined_call_operand.vmem [shape: f32[1,8], index: 4, kind: input, shape index: {}]   ;;  %s486_s5 = inlined_call_operand.hbm [shape: f32[2,8], index: 5, kind: output, shape index: {}]  }
   0x1   :  { %v331_v0 = vld [vmem:[%s482_s1 + $0x4] ss:$8 sps:$4 sm:$0xff]   ;;  %v333_v1 = vld [vmem:[%s482_s1] ss:$8 sps:$4 sm:$0xff]   ;;  %83 = vmatprep.mubr.bf16.mxu0 %v374_v2  ;;  %v338_v8 = vld [vmem:[%s484_s3 + $0x50] sm:$0xff]  }
   0x2   :  { %v22_v3 = vld [vmem:[%s481_s0] sm:$0x1]  ;;  %51 = vmatprep.subr.bf16.mxu0 %v331_v0  ;;  %v336_v6 = vld [vmem:[%s484_s3 + $0x48] sm:$0xff]   ;;  %v339_v9 = vld [vmem:[%s484_s3 + $0x10] sm:$0xff]  }
   0x3   :  { %v334_v4 = vld [vmem:[%s484_s3 + $0x40] sm:$0xff]   ;;  %52 = vmatpush1.bf16.msra.mxu0 %v333_v1  ;;  %v337_v7 = vld [vmem:[%s484_s3 + $0x8] sm:$0xff]   ;;  %v340_v10 = vld [vmem:[%s484_s3 + $0x58] sm:$0xff]  }
   0x4   :  { %v335_v5 = vld [vmem:[%s484_s3] sm:$0xff]   ;;  %307 = vmatprep.subr.bf16.mxu1 %v334_v4  ;;  %v341_v11 = vld [vmem:[%s484_s3 + $0x18] sm:$0xff]  }
   0x5   :  { %308 = vmatpush3.bf16.msra.mxu1 %v335_v5  ;;  %v342_v12 = vld [vmem:[%s484_s3 + $0x60] sm:$0xff]  }
   0x6   :  { %289 = vmatmul.mubr.msk.bf16.vlgmr.msra.gmra.mrb[0].mxu0 %vm47_vm0, %v22_v3  ;;  %309 = vmatprep.subr.bf16.mxu1 %v336_v6 }
   0x9   :  { %310 = vmatpush3.bf16.msra.mxu1 %v337_v7 }
   0xa   :  { %311 = vmatprep.subr.bf16.mxu1 %v338_v8 }
   0xd   :  { %312 = vmatpush3.bf16.msra.mxu1 %v339_v9 }
   0xe   :  { %313 = vmatprep.subr.bf16.mxu1 %v340_v10 }
   0xf   :  { %10 = vsyncpa [#allocation3], 0  ;;  %v343_v13 = vld [vmem:[%s484_s3 + $0x20] sm:$0xff]   ;;  %v344_v14 = vld [vmem:[%s484_s3 + $0x68] sm:$0xff]   ;;  %v27_v20 = vlaneseq  ;;  %vm271_vm1 = vcmask 58368  }
  0x10   :  { %v345_v15 = vld [vmem:[%s484_s3 + $0x28] sm:$0xff]   ;;  %v346_v16 = vld [vmem:[%s484_s3 + $0x70] sm:$0xff]   ;;  %v348_v18 = vld [vmem:[%s484_s3 + $0x78] sm:$0xff]  }
  0x11   :  { %314 = vmatpush3.bf16.msra.mxu1 %v341_v11  ;;  %v347_v17 = vld [vmem:[%s484_s3 + $0x30] sm:$0xff]   ;;  %v349_v19 = vld [vmem:[%s484_s3 + $0x38] sm:$0xff]   ;;  %v28_v21 = vshrl.u32 %v27_v20, 7  ;;  %v25_v23 = vld [vmem:[%s483_s2] sm:$0x3]  ;;  %s375_s2 = smov [#allocation2]  }
  0x12   :  { %315 = vmatprep.subr.bf16.mxu1 %v342_v12  ;;  %v290_v38 = vld [vmem:[%s485_s4] ss:$0 sm:$0xff]  ;;  %s279_s0 = sshll.u32 %s375_s2, 4  ;;  %s280_s0 = int_to_ptr.vmem [resolvable:$true] %s279_s0 }
  0x13   :  { %v29_v22 = vsub.s32 0, %v28_v21  ;;  %v33_v24 = vsub.s32 1, %v28_v21  ;;  %s350_s6 = scalar_lea.vmem %s280_s0, 32  ;;  %p355_p1 = scmp.lt.s32.totalorder %s280_s0, %s280_s0 }
  0x14   :  { %p351_p0 = scmp.ne.s32.totalorder %s280_s0, %s350_s6  ;;  %p356_p2 = scmp.lt.s32.totalorder %s350_s6, %s350_s6 }
  0x15   :  { %316 = vmatpush3.bf16.msra.mxu1 %v343_v13  ;;  %v30_v25 = vrot.slane %v25_v23, %v29_v22  ;;  %v34_v26 = vrot.slane %v25_v23, %v33_v24 }
  0x16   :  { %317 = vmatprep.subr.bf16.mxu1 %v344_v14  ;;  %p357_p3 = por %p356_p2, %p355_p1 }
  0x18   :  { %p358_p4 = pnand %p357_p3, %p351_p0 }
  0x19   :  { %318 = vmatpush3.bf16.msra.mxu1 %v345_v15 }
  0x1a   :  { %319 = vmatprep.subr.bf16.mxu1 %v346_v16 }
  0x1d   :  { %320 = vmatpush3.bf16.msra.mxu1 %v347_v17 }
  0x1e   :  { %321 = vmatprep.subr.bf16.mxu1 %v348_v18 }
  0x21   :  { %322 = vmatpush3.bf16.msra.mxu1 %v349_v19 }
  0xd9   :  { %v85_v27 = vpop.f32.mrb[0].mxu0 }
  0xda   :  { %v86_v28 = vadd.f32 %v85_v27, %v30_v25  ;;  %v87_v29 = vpop.f32.mrb[1].mxu0 }
  0xdb   :  { %v88_v30 = vadd.f32 %v87_v29, %v34_v26  ;;  %v89_v31 = vpop.f32.mrb[2].mxu0 }
  0xdc   :  { %v92_v32 = vmax.f32 %v86_v28, 0.0  ;;  %v90_v33 = vpop.f32.mrb[3].mxu0 }
  0xdd   :  { %v93_v34 = vmax.f32 %v88_v30, 0.0 }
  0xde   :  { %v94_v36 = vpack.c.bf16 %v92_v32, %v92_v32 }
  0xdf   :  { %v95_v35 = vpack.c.bf16 %v93_v34, %v93_v34 }
  0xe1   :  { %263 = vmatprep.mubr.bf16.mxu1 %v95_v35 }
  0xe2   :  { %264 = vmatmul.mubr.bf16.vlgmr.msra.gmra.mrb[0].mxu1 %v94_v36 }
 0x1b5   :  { %v323_v37 = vpop.f32.mrb[0].mxu1 }
 0x1b6   :  { %v324_v39 = vpop.f32.mrb[1].mxu1 }
 0x1b7   :  { %v325_v40 = vadd.f32 %v324_v39, %v323_v37  ;;  %v326_v41 = vpop.f32.mrb[2].mxu1 }
 0x1b8   :  { %v327_v42 = vpop.f32.mrb[3].mxu1 }
 0x1b9   :  { %v266_v43 = vadd.f32 %v325_v40, %v290_v38 }
 0x1bb   :  { %272 = vst.msk [vmem:[#allocation2] sm:$0x3] %vm271_vm1, %v266_v43 }
 0x1bc   :  { %361 = shalt.err (!%p358_p4)
}
 0x1bd   :  { %s362_s4 = scalar_lea.hbm %s486_s5, 32 }
 0x1be   :  { %p363_p5 = scmp.ne.s32.totalorder %s486_s5, %s362_s4  ;;  %p366_p6 = scmp.lt.u32.totalorder %s362_s4, %s486_s5 }
 0x1c0   :  { %p368_p7 = pnand %p366_p6, %p363_p5 }
 0x1c2   :  { %371 = shalt.err (!%p368_p7)
}
 0x1c3   :  { %282 = dma.vmem_to_hbm [thread:$0]  %s280_s0, 32, %s486_s5, [#allocation3]  }
 0x1c4   :  { %372 = dma.done.wait [#allocation3], 32  }
 0x1c5   :  { %373 = vsyncadd [#allocation3], 4294967264 }
 0x1c6   :  { %286 = vsyncpa [#allocation3], 1 }

</bundles_post_ra>
